<compile_context>
chip_gen: v5e
topology: v5e:2x2
jax: 0.10.0
libtpu: 0.0.40
codegen_flags: <defaults>
</compile_context>

<pallas_src>
import functools

import jax
import jax.numpy as jnp
from jax.experimental import pallas as pl
from jax.experimental.pallas import tpu as pltpu

LANE = 128


def _round_up(n, m):
    return ((n + m - 1) // m) * m


def ppo_actor_sample_kernel(x_ref, w1_ref, b1_ref, w2_ref, b2_ref, u_ref,
                            out_ref, *, num_actions):
    # ---- actor MLP: x (TM, S) @ w1 (S, H_pad); h @ w2 (H_pad, A_pad) ----
    x = x_ref[...]
    h = jnp.dot(x, w1_ref[...], preferred_element_type=jnp.float32) + b1_ref[...]
    h = jnp.maximum(h, 0.0)                                       # ReLU
    logits = jnp.dot(h, w2_ref[...],
                     preferred_element_type=jnp.float32) + b2_ref[...]

    # ---- softmax; padded action lanes carry a -1e30 bias so exp() == 0 and
    #      the denominator only sees the real `num_actions` lanes ----
    m = jnp.max(logits, axis=-1, keepdims=True)
    e = jnp.exp(logits - m)
    denom = jnp.sum(e, axis=-1, keepdims=True)
    probs = e * pl.reciprocal(denom, approx=True)                 # (TM, A_pad)

    # ---- Categorical sample via inverse CDF.  Hillis-Steele prefix sum with
    #      ceil(log2(A)) XLU rolls; the CDF is only read on lanes < A, so the
    #      short scan is exact where it matters (padded lanes are masked out
    #      of the count). ----
    lane = jax.lax.broadcasted_iota(jnp.int32, probs.shape, 1)    # (TM, A_pad)
    cdf = probs
    shift = 1
    while shift < num_actions:                                    # static unroll
        rolled = pltpu.roll(cdf, shift, axis=1)
        cdf = cdf + jnp.where(lane >= shift, rolled, 0.0)
        shift *= 2

    u = u_ref[...]                                                # (TM, 1)
    take = jnp.where(jnp.logical_and(cdf < u, lane < num_actions), 1.0, 0.0)
    idx = jnp.sum(take, axis=-1, keepdims=True)                   # int-valued f32
    idx = jnp.minimum(idx, float(num_actions - 1))                # fp edge clamp

    # Pack the action index into the (otherwise zero) last padded lane ->
    # a single unmasked, lane-dense output store.
    last = probs.shape[-1] - 1
    out_ref[...] = jnp.where(lane == last, idx, probs)


def pad_ppo_params(params):
    """One-time lane-padding of the actor parameters (output dims only)."""
    w1, b1, w2, b2 = params["w1"], params["b1"], params["w2"], params["b2"]
    S, H = w1.shape
    _, A = w2.shape
    H_p = _round_up(H, LANE)
    A_p = _round_up(A + 1, LANE)   # +1 reserves >=1 spare lane for the action
    w1_p = jnp.zeros((S, H_p), jnp.float32).at[:, :H].set(w1)
    b1_p = jnp.zeros((1, H_p), jnp.float32).at[:, :H].set(b1)
    w2_p = jnp.zeros((H_p, A_p), jnp.float32).at[:H, :A].set(w2)
    # -1e30 in padded logit lanes -> exp underflows to exactly 0 probability.
    b2_p = jnp.full((1, A_p), -1e30, jnp.float32).at[:, :A].set(b2)
    return dict(w1=w1_p, b1=b1_p, w2=w2_p, b2=b2_p,
                S=S, H=H, A=A, H_pad=H_p, A_pad=A_p)


def ppo_forward(x, u, padded, *, block_m=128):
    """Batched PPO actor forward + categorical sample in one Pallas kernel.

    Returns (probs (B, A) f32, actions (B,) i32).
    block_m=128 keeps >=2 parallel grid steps for v7x at B=256; use 256 on
    v5e/v6e to halve per-grid-step overhead.
    """
    B, S = x.shape
    A, A_p = padded["A"], padded["A_pad"]
    B_p = _round_up(B, block_m)
    if B_p != B:   # rare: only when B is not already a multiple of block_m
        x = jnp.zeros((B_p, S), x.dtype).at[:B].set(x)
        u = jnp.zeros((B_p, 1), u.dtype).at[:B].set(u)

    out = pl.pallas_call(
        functools.partial(ppo_actor_sample_kernel, num_actions=A),
        out_shape=jax.ShapeDtypeStruct((B_p, A_p), jnp.float32),
        grid=(B_p // block_m,),
        in_specs=[
            pl.BlockSpec((block_m, S), lambda i: (i, 0)),          # x (pipelined)
            pl.BlockSpec(padded["w1"].shape, lambda i: (0, 0)),    # w1 (resident)
            pl.BlockSpec(padded["b1"].shape, lambda i: (0, 0)),    # b1
            pl.BlockSpec(padded["w2"].shape, lambda i: (0, 0)),    # w2
            pl.BlockSpec(padded["b2"].shape, lambda i: (0, 0)),    # b2
            pl.BlockSpec((block_m, 1), lambda i: (i, 0)),          # uniforms
        ],
        out_specs=pl.BlockSpec((block_m, A_p), lambda i: (i, 0)),  # probs+action
        compiler_params=pltpu.CompilerParams(
            dimension_semantics=("parallel",)),
    )(x, padded["w1"], padded["b1"], padded["w2"], padded["b2"], u)

    probs = out[:B, :A]
    actions = out[:B, A_p - 1].astype(jnp.int32)   # decode packed action lane
    return probs, actions


if __name__ == "__main__":
    # Batched rollout states: 256 obs of dim 8, hidden 32, 4 actions.
    B, S, H, A = 256, 8, 32, 4

    key = jax.random.PRNGKey(0)
    kx, k1, k2, k3, k4, ku = jax.random.split(key, 6)
    params = {
        "w1": jax.random.normal(k1, (S, H), jnp.float32) * 0.1,
        "b1": jax.random.normal(k3, (1, H), jnp.float32) * 0.01,
        "w2": jax.random.normal(k2, (H, A), jnp.float32) * 0.1,
        "b2": jax.random.normal(k4, (1, A), jnp.float32) * 0.01,
    }
    x = jax.random.normal(kx, (B, S), jnp.float32)
    u = jax.random.uniform(ku, (B, 1), jnp.float32)   # sampling uniforms

    padded = pad_ppo_params(params)                   # one-time setup
    probs, actions = ppo_forward(x, u, padded)
    jax.block_until_ready((probs, actions))

    # ---- pure-JAX reference checks ----
    h_ref = jnp.maximum(x @ params["w1"] + params["b1"], 0.0)
    logits_ref = h_ref @ params["w2"] + params["b2"]
    probs_ref = jax.nn.softmax(logits_ref, axis=-1)
    assert probs.shape == (B, A) and actions.shape == (B,)
    assert jnp.allclose(probs, probs_ref, atol=2e-3), "probs mismatch"
    assert bool(jnp.all((actions >= 0) & (actions < A))), "action out of range"

    # Sampling path: inverse CDF of the kernel's own probs.  Allow a mismatch
    # only where u sits within fp tolerance of a CDF boundary (accumulation
    # order / approx reciprocal can shift boundaries by ~1 ulp).
    cdf_k = jnp.cumsum(probs, axis=-1)
    action_ref = jnp.minimum(
        jnp.sum((cdf_k < u).astype(jnp.int32), axis=-1), A - 1)
    near_boundary = jnp.any(jnp.abs(cdf_k - u) < 1e-5, axis=-1)
    assert bool(jnp.all((actions == action_ref) | near_boundary)), "action mismatch"

    _ = int(actions[0])  # mirrors PPO.forward's `action.item()`
    print("KERNEL_OK")
</pallas_src>

<mosaic_0001>
module attributes {stable_mosaic.version = 11 : i64} {
  func.func @ppo_actor_sample_kernel(%arg0: i32, %arg1: memref<128x8xf32, #tpu.memory_space<vmem>>, %arg2: memref<8x128xf32, #tpu.memory_space<vmem>>, %arg3: memref<1x128xf32, #tpu.memory_space<vmem>>, %arg4: memref<128x128xf32, #tpu.memory_space<vmem>>, %arg5: memref<1x128xf32, #tpu.memory_space<vmem>>, %arg6: memref<128x1xf32, #tpu.memory_space<vmem>>, %arg7: memref<128x128xf32, #tpu.memory_space<vmem>>) attributes {dimension_semantics = [#tpu.dimension_semantics<parallel>], iteration_bounds = array<i64: 2>, scalar_prefetch = 0 : i64, scratch_operands = 0 : i64, tpu.core_type = #tpu.core_type<tc>, window_params = [{transform_indices = @transform_0, window_bounds = array<i64: 128, 8>}, {pipeline_mode = #tpu.pipeline_mode<synchronous>, transform_indices = @transform_1, window_bounds = array<i64: 8, 128>}, {pipeline_mode = #tpu.pipeline_mode<synchronous>, transform_indices = @transform_2, window_bounds = array<i64: 1, 128>}, {pipeline_mode = #tpu.pipeline_mode<synchronous>, transform_indices = @transform_3, window_bounds = array<i64: 128, 128>}, {pipeline_mode = #tpu.pipeline_mode<synchronous>, transform_indices = @transform_4, window_bounds = array<i64: 1, 128>}, {transform_indices = @transform_5, window_bounds = array<i64: 128, 1>}, {transform_indices = @transform_6, window_bounds = array<i64: 128, 128>}]} {
    %c0 = arith.constant 0 : index
    %c0_0 = arith.constant 0 : index
    %0 = vector.load %arg1[%c0, %c0_0] : memref<128x8xf32, #tpu.memory_space<vmem>>, vector<128x8xf32>
    %c0_1 = arith.constant 0 : index
    %c0_2 = arith.constant 0 : index
    %1 = vector.load %arg2[%c0_1, %c0_2] : memref<8x128xf32, #tpu.memory_space<vmem>>, vector<8x128xf32>
    %cst = arith.constant dense<0.000000e+00> : vector<128x128xf32>
    %2 = tpu.matmul %0, %1, %cst {dimension_numbers = #tpu.dot_dimension_numbers<[1], [0], [0], [1], [0, 0, 1, 1], [], []>} : vector<128x8xf32>, vector<8x128xf32>, vector<128x128xf32> -> vector<128x128xf32>
    %c0_3 = arith.constant 0 : index
    %c0_4 = arith.constant 0 : index
    %3 = vector.load %arg3[%c0_3, %c0_4] : memref<1x128xf32, #tpu.memory_space<vmem>>, vector<1x128xf32>
    %4 = vector.broadcast %3 : vector<1x128xf32> to vector<128x128xf32>
    %5 = arith.addf %2, %4 : vector<128x128xf32>
    %cst_5 = arith.constant 0.000000e+00 : f32
    %6 = vector.broadcast %cst_5 : f32 to vector<128x128xf32>
    %7 = arith.maximumf %5, %6 : vector<128x128xf32>
    %c0_6 = arith.constant 0 : index
    %c0_7 = arith.constant 0 : index
    %8 = vector.load %arg4[%c0_6, %c0_7] : memref<128x128xf32, #tpu.memory_space<vmem>>, vector<128x128xf32>
    %cst_8 = arith.constant dense<0.000000e+00> : vector<128x128xf32>
    %9 = tpu.matmul %7, %8, %cst_8 {dimension_numbers = #tpu.dot_dimension_numbers<[1], [0], [0], [1], [0, 0, 1, 1], [], []>} : vector<128x128xf32>, vector<128x128xf32>, vector<128x128xf32> -> vector<128x128xf32>
    %c0_9 = arith.constant 0 : index
    %c0_10 = arith.constant 0 : index
    %10 = vector.load %arg5[%c0_9, %c0_10] : memref<1x128xf32, #tpu.memory_space<vmem>>, vector<1x128xf32>
    %11 = vector.broadcast %10 : vector<1x128xf32> to vector<128x128xf32>
    %12 = arith.addf %9, %11 : vector<128x128xf32>
    %cst_11 = arith.constant dense<0xFF800000> : vector<128xf32>
    %13 = vector.multi_reduction <maximumf>, %12, %cst_11 [1] : vector<128x128xf32> to vector<128xf32>
    %14 = vector.shape_cast %13 : vector<128xf32> to vector<128x1xf32>
    %15 = vector.broadcast %14 : vector<128x1xf32> to vector<128x128xf32>
    %16 = arith.subf %12, %15 : vector<128x128xf32>
    %17 = math.exp %16 : vector<128x128xf32>
    %cst_12 = arith.constant dense<0.000000e+00> : vector<128xf32>
    %18 = vector.multi_reduction <add>, %17, %cst_12 [1] : vector<128x128xf32> to vector<128xf32>
    %19 = vector.shape_cast %18 : vector<128xf32> to vector<128x1xf32>
    %20 = tpu.reciprocal %19 {approx = true} : vector<128x1xf32> -> vector<128x1xf32>
    %21 = vector.broadcast %20 : vector<128x1xf32> to vector<128x128xf32>
    %22 = arith.mulf %17, %21 : vector<128x128xf32>
    %23 = tpu.iota {dimensions = array<i32: 1>} : vector<128x128xi32>
    %c1_i32 = arith.constant 1 : i32
    %24 = tpu.dynamic_rotate %22 by %c1_i32 dim 1 : vector<128x128xf32>, i32 -> vector<128x128xf32>
    %c1_i32_13 = arith.constant 1 : i32
    %25 = vector.broadcast %c1_i32_13 : i32 to vector<128x128xi32>
    %26 = arith.cmpi sge, %23, %25 : vector<128x128xi32>
    %cst_14 = arith.constant 0.000000e+00 : f32
    %27 = vector.broadcast %cst_14 : f32 to vector<128x128xf32>
    %28 = arith.select %26, %24, %27 : vector<128x128xi1>, vector<128x128xf32>
    %29 = arith.addf %22, %28 : vector<128x128xf32>
    %c2_i32 = arith.constant 2 : i32
    %30 = tpu.dynamic_rotate %29 by %c2_i32 dim 1 : vector<128x128xf32>, i32 -> vector<128x128xf32>
    %c2_i32_15 = arith.constant 2 : i32
    %31 = vector.broadcast %c2_i32_15 : i32 to vector<128x128xi32>
    %32 = arith.cmpi sge, %23, %31 : vector<128x128xi32>
    %cst_16 = arith.constant 0.000000e+00 : f32
    %33 = vector.broadcast %cst_16 : f32 to vector<128x128xf32>
    %34 = arith.select %32, %30, %33 : vector<128x128xi1>, vector<128x128xf32>
    %35 = arith.addf %29, %34 : vector<128x128xf32>
    %c0_17 = arith.constant 0 : index
    %c0_18 = arith.constant 0 : index
    %36 = vector.load %arg6[%c0_17, %c0_18] : memref<128x1xf32, #tpu.memory_space<vmem>>, vector<128x1xf32>
    %37 = vector.broadcast %36 : vector<128x1xf32> to vector<128x128xf32>
    %38 = arith.cmpf olt, %35, %37 : vector<128x128xf32>
    %c4_i32 = arith.constant 4 : i32
    %39 = vector.broadcast %c4_i32 : i32 to vector<128x128xi32>
    %40 = arith.cmpi slt, %23, %39 : vector<128x128xi32>
    %41 = arith.andi %38, %40 : vector<128x128xi1>
    %cst_19 = arith.constant 1.000000e+00 : f32
    %cst_20 = arith.constant 0.000000e+00 : f32
    %42 = vector.broadcast %cst_19 : f32 to vector<128x128xf32>
    %43 = vector.broadcast %cst_20 : f32 to vector<128x128xf32>
    %44 = arith.select %41, %42, %43 : vector<128x128xi1>, vector<128x128xf32>
    %cst_21 = arith.constant dense<0.000000e+00> : vector<128xf32>
    %45 = vector.multi_reduction <add>, %44, %cst_21 [1] : vector<128x128xf32> to vector<128xf32>
    %46 = vector.shape_cast %45 : vector<128xf32> to vector<128x1xf32>
    %cst_22 = arith.constant 3.000000e+00 : f32
    %47 = vector.broadcast %cst_22 : f32 to vector<128x1xf32>
    %48 = arith.minimumf %46, %47 : vector<128x1xf32>
    %c127_i32 = arith.constant 127 : i32
    %49 = vector.broadcast %c127_i32 : i32 to vector<128x128xi32>
    %50 = arith.cmpi eq, %23, %49 : vector<128x128xi32>
    %51 = vector.shape_cast %48 : vector<128x1xf32> to vector<128x1xf32>
    %52 = vector.broadcast %51 : vector<128x1xf32> to vector<128x128xf32>
    %53 = arith.select %50, %52, %22 : vector<128x128xi1>, vector<128x128xf32>
    %c0_23 = arith.constant 0 : index
    %c0_24 = arith.constant 0 : index
    %54 = vector.load %arg7[%c0_23, %c0_24] : memref<128x128xf32, #tpu.memory_space<vmem>>, vector<128x128xf32>
    tpu.vector_store %arg7[%c0_23, %c0_24], %53 {strides = array<i32>} : memref<128x128xf32, #tpu.memory_space<vmem>>, vector<128x128xf32>,
    return
  }
  func.func @transform_0(%arg0: i32) -> (i32, i32) {
    %c0_i32 = arith.constant 0 : i32
    %c0_i32_0 = arith.constant 0 : i32
    return %arg0, %c0_i32 : i32, i32
  }
  func.func @transform_1(%arg0: i32) -> (i32, i32) {
    %c0_i32 = arith.constant 0 : i32
    %c0_i32_0 = arith.constant 0 : i32
    %c0_i32_1 = arith.constant 0 : i32
    return %c0_i32, %c0_i32_0 : i32, i32
  }
  func.func @transform_2(%arg0: i32) -> (i32, i32) {
    %c0_i32 = arith.constant 0 : i32
    %c0_i32_0 = arith.constant 0 : i32
    %c0_i32_1 = arith.constant 0 : i32
    return %c0_i32, %c0_i32_0 : i32, i32
  }
  func.func @transform_3(%arg0: i32) -> (i32, i32) {
    %c0_i32 = arith.constant 0 : i32
    %c0_i32_0 = arith.constant 0 : i32
    %c0_i32_1 = arith.constant 0 : i32
    return %c0_i32, %c0_i32_0 : i32, i32
  }
  func.func @transform_4(%arg0: i32) -> (i32, i32) {
    %c0_i32 = arith.constant 0 : i32
    %c0_i32_0 = arith.constant 0 : i32
    %c0_i32_1 = arith.constant 0 : i32
    return %c0_i32, %c0_i32_0 : i32, i32
  }
  func.func @transform_5(%arg0: i32) -> (i32, i32) {
    %c0_i32 = arith.constant 0 : i32
    %c0_i32_0 = arith.constant 0 : i32
    return %arg0, %c0_i32 : i32, i32
  }
  func.func @transform_6(%arg0: i32) -> (i32, i32) {
    %c0_i32 = arith.constant 0 : i32
    %c0_i32_0 = arith.constant 0 : i32
    return %arg0, %c0_i32 : i32, i32
  }
}

</mosaic_0001>

<bundles_post_ra>
// kernel: tpu_custom_call.1
= control target key start
LH: loop header
LB: loop body
LE: loop exit
PB: predicated region body
PF: predicated region fallthrough
CT: control target
= control target key end

     0   :  { %11 = vsyncpa [#allocation3], 0  ;;  %s2129_s0 = inlined_call_operand.vmem [shape: f32[256,8], index: 0, kind: input, shape index: {}]   ;;  %s2130_s1 = inlined_call_operand.vmem [shape: f32[8,128], index: 1, kind: input, shape index: {}]   ;;  %s2131_s2 = inlined_call_operand.vmem [shape: f32[1,128], index: 2, kind: input, shape index: {}]   ;;  %s2132_s3 = inlined_call_operand.vmem [shape: f32[128,128], index: 3, kind: input, shape index: {}]   ;;  %s2133_s4 = inlined_call_operand.vmem [shape: f32[1,128], index: 4, kind: input, shape index: {}]   ;;  %s2134_s5 = inlined_call_operand.vmem [shape: f32[256,1], index: 5, kind: input, shape index: {}]   ;;  %s2135_s6 = inlined_call_operand.hbm [shape: f32[256,128], index: 6, kind: output, shape index: {}]  }
   0x1   :  { %13 = vsyncpa [#allocation3 + $0x1], 0  ;;  %s1386_s21 = smov 0   ;;  %s1388_s22 = smov 0  }
   0x2   :  { %s1390_s23 = smov 0   ;;  %s1392_s24 = smov 0  }
   0x3 LB: > { %s1407_s25 = sadd.s32 4294967295, %s1343_s24   ;;  %s1103_s26 = sadd.s32 4294967294, %s1343_s24   ;;  %s1343_s24 = sphi %s1392_s24, %s2141_s24   ;;  %s1339_s23 = sphi %s1390_s23, %s2140_s23   ;;  %s1335_s22 = sphi %s1388_s22, %s2139_s22   ;;  %s1331_s21 = sphi %s1386_s21, %s2138_s21  }
   0x4   : > { %s1411_s27 = sadd.s32 1, %s1343_s24   ;;  %s162_s28 = sadd.s32 1, %s1339_s23 }
   0x5   : > { %s159_s29 = ssub.s32 %s1343_s24, %s1411_s27  ;;  %p172_p0 = scmp.ne.s32.totalorder %s1339_s23, %s1335_s22 }
   0x6   : > { %p160_p1 = scmp.eq.s32.totalorder %s159_s29, 0  ;;  %p173_p2 = scmp.eq.s32.totalorder %s1407_s25, 1 }
   0x7   : > { %p178_p3 = scmp.ne.s32.totalorder %s1335_s22, %s1331_s21  ;;  %p179_p4 = scmp.eq.s32.totalorder %s1103_s26, 1 }
   0x8   : > { %s1422_s30 = scalar_select %p160_p1, %s1339_s23, %s162_s28  }
   0x9   : > { %p1424_p5 = por %p173_p2, %p172_p0  ;;  %p1428_p6 = por %p179_p4, %p178_p3 }
   0xa   : > { %p1106_p7 = scmp.ge.s32.totalorder %s1343_s24, 1  ;;  %p227_p8 = scmp.lt.s32.totalorder %s1343_s24, 3 }
   0xc   : > { %p228_p9 = pnand %p1106_p7, %p227_p8 }
   0xd   : > { %s1108_s11 = sshll.u32 (!%p228_p9), %s1407_s25, 4  ;;  %s1346_s16 = smov (!%p228_p9), 1  }
   0xe   : > { %231 = sbr.rel (%p228_p9) target bundleno = 1005 (0x3ed), region = 44  ;;  %p263_p10 = scmp.lt.s32.totalorder (!%p228_p9), %s1108_s11, 31 }
   0xf   : > { %s1347_s17 = smov (!%p228_p9), 2   ;;  %s259_s18 = sand.u32 (!%p228_p9), 1, %s1335_s22  }
  0x10   : > { %s1107_s19 = sshll.u32 (!%p228_p9), %s259_s18, 7  ;;  %s1133_s26 = sshll.u32 (!%p228_p9), %s1407_s25, 7 }
  0x11   : > { %s2032_s20 = scalar_lea.vmem (!%p228_p9), [#allocation2], %s1107_s19  ;;  %s1014_s25 = scalar_lea.sflag (!%p228_p9), [#allocation3], %s259_s18 }
  0x12   : > { %s1026_s9 = sshll.u32 (!%p228_p9), %s2032_s20, 4  ;;  %s1027_s9 = int_to_ptr.vmem [resolvable:$true] %s1026_s9 }
  0x13   : > { %v291_v0 = vld [vmem:[%s2130_s1] sm:$0xff]  ;;  %s2143_s11 = smov (!%p263_p10, %s1108_s11), 31  ;;  %vm296_vm0 = vcmask 64512   ;;  %v441_v13 = vld [vmem:[%s2132_s3 + $0x78] sm:$0xff]  ;;  %v440_v14 = vld [vmem:[%s2132_s3 + $0x70] sm:$0xff]  ;;  %v1345_v54 = vmov 0  }
  0x14   : > { %360 = vmatpush.msra.mxu0 %v291_v0  ;;  %1134 = vmatpush.msra.mxu3 %v291_v0  ;;  %s1109_s12 = sshll.u32 %s2143_s11, 3  ;;  %v439_v15 = vld [vmem:[%s2132_s3 + $0x68] sm:$0xff]  ;;  %v438_v16 = vld [vmem:[%s2132_s3 + $0x60] sm:$0xff]  ;;  %v437_v18 = vld [vmem:[%s2132_s3 + $0x58] sm:$0xff] }
  0x15   : > { %s1446_s15 = scalar_lea.vmem %s2129_s0, %s1109_s12  ;;  %446 = vmatpush.msra.mxu1 %v441_v13  ;;  %1135 = vmatpush.msra.mxu2 %v441_v13  ;;  %v436_v19 = vld [vmem:[%s2132_s3 + $0x50] sm:$0xff]  ;;  %v435_v20 = vld [vmem:[%s2132_s3 + $0x48] sm:$0xff]  ;;  %v434_v21 = vld [vmem:[%s2132_s3 + $0x40] sm:$0xff]  ;;  %s1549_s14 = scalar_lea.vmem %s2134_s5, %s1109_s12 }
  0x16   : > { %v275_v1 = vld [vmem:[%s1446_s15] sm:$0xff]  ;;  %v285_v2 = vld [vmem:[%s1446_s15 + $0x50] sm:$0xff]  ;;  %v276_v3 = vld [vmem:[%s1446_s15 + $0x8] sm:$0xff]  ;;  %1136 = vmatpush.msrb.mxu3 %v441_v13  ;;  %1214 = vset.pattern.permute.xlu0 %v1345_v54 }
  0x17   : > { %1112 = vmatmul.msk.f32.vlgmr.msra.gmra.mxu0 %vm296_vm0, %v275_v1  ;;  %1122 = vmatmul.msk.f32.vlgmr.msra.gmra.mxu3 %vm296_vm0, %v285_v2  ;;  %v286_v4 = vld [vmem:[%s1446_s15 + $0x58] sm:$0xff]  ;;  %v277_v5 = vld [vmem:[%s1446_s15 + $0x10] sm:$0xff]  ;;  %v287_v6 = vld [vmem:[%s1446_s15 + $0x60] sm:$0xff] }
  0x18   : > { %v278_v7 = vld [vmem:[%s1446_s15 + $0x18] sm:$0xff]  ;;  %v288_v8 = vld [vmem:[%s1446_s15 + $0x68] sm:$0xff]  ;;  %v279_v9 = vld [vmem:[%s1446_s15 + $0x20] sm:$0xff]  ;;  %447 = vmatpush.msra.mxu1 %v440_v14  ;;  %1138 = vmatpush.msrb.mxu3 %v440_v14 }
  0x19   : > { %v289_v10 = vld [vmem:[%s1446_s15 + $0x70] sm:$0xff]  ;;  %v280_v11 = vld [vmem:[%s1446_s15 + $0x28] sm:$0xff]  ;;  %v290_v12 = vld [vmem:[%s1446_s15 + $0x78] sm:$0xff]  ;;  %1137 = vmatpush.msra.mxu2 %v440_v14  ;;  %1213 = vset.pattern.permute.xlu1 %v1345_v54 }
  0x1a   : > { %v281_v17 = vld [vmem:[%s1446_s15 + $0x30] sm:$0xff]  ;;  %448 = vmatpush.msra.mxu1 %v439_v15  ;;  %1140 = vmatpush.msrb.mxu3 %v439_v15  ;;  %v282_v22 = vld [vmem:[%s1446_s15 + $0x38] sm:$0xff]  ;;  %v431_v25 = vld [vmem:[%s2132_s3 + $0x28] sm:$0xff] }
  0x1b   : > { %1139 = vmatpush.msra.mxu2 %v439_v15  ;;  %v433_v23 = vld [vmem:[%s2132_s3 + $0x38] sm:$0xff]  ;;  %v432_v24 = vld [vmem:[%s2132_s3 + $0x30] sm:$0xff]  ;;  %v430_v26 = vld [vmem:[%s2132_s3 + $0x20] sm:$0xff]  ;;  %1212 = vset.pattern.permute.xlu2 %v1345_v54 }
  0x1c   : > { %449 = vmatpush.msra.mxu1 %v438_v16  ;;  %1142 = vmatpush.msrb.mxu3 %v438_v16  ;;  %v283_v27 = vld [vmem:[%s1446_s15 + $0x40] sm:$0xff]  ;;  %v429_v28 = vld [vmem:[%s2132_s3 + $0x18] sm:$0xff]  ;;  %v284_v29 = vld [vmem:[%s1446_s15 + $0x48] sm:$0xff]  ;;  %s1025_s15 = scalar_lea.hbm %s2135_s6, %s1133_s26 }
  0x1d   : > { %1141 = vmatpush.msra.mxu2 %v438_v16  ;;  %v428_v30 = vld [vmem:[%s2132_s3 + $0x10] sm:$0xff]  ;;  %v427_v31 = vld [vmem:[%s2132_s3 + $0x8] sm:$0xff]  ;;  %v426_v32 = vld [vmem:[%s2132_s3] sm:$0xff]  ;;  %s1028_s10 = sshll.u32 %s1025_s15, 4  ;;  %s1029_s10 = int_to_ptr.hbm [resolvable:$true] %s1028_s10 }
  0x1e   : > { %450 = vmatpush.msra.mxu1 %v437_v18  ;;  %1144 = vmatpush.msrb.mxu3 %v437_v18  ;;  %v1531_v33 = vld [vmem:[%s2131_s2] ss:$0 sm:$0xff]  ;;  %v789_v55 = vld [vmem:[%s1549_s14 + $0x10] sm:$0xff]  ;;  %v788_v56 = vld [vmem:[%s1549_s14 + $0x8] sm:$0xff]  ;;  %s1295_s13 = sshra.s32 %s1029_s10, 4  ;;  %s1296_s13 = int_to_ptr.hbm [resolvable:$true] %s1295_s13 }
  0x1f   : > { %1113 = vmatmul.msk.f32.gmra.mxu0 %vm296_vm0, %v276_v3  ;;  %1123 = vmatmul.msk.f32.gmra.mxu3 %vm296_vm0, %v286_v4  ;;  %v794_v63 = vld [vmem:[%s1549_s14 + $0x38] sm:$0xff]  ;;  %v791_v0 = vld [vmem:[%s1549_s14 + $0x20] sm:$0xff]  ;;  %v800_v13 = vld [vmem:[%s1549_s14 + $0x68] sm:$0xff]  ;;  %p1302_p0 = scmp.lt.s32.totalorder %s1296_s13, %s2135_s6 }
  0x20   : > { %1143 = vmatpush.msra.mxu2 %v437_v18  ;;  %451 = vmatpush.msra.mxu1 %v436_v19  ;;  %v787_v2 = vld [vmem:[%s1549_s14] sm:$0xff]  ;;  %v796_v15 = vld [vmem:[%s1549_s14 + $0x48] sm:$0xff] }
  0x21   : > { %1146 = vmatpush.msrb.mxu3 %v436_v19  ;;  %815 = vperm.xlu0 %1214, %v789_v55  }
  0x22   : > { %1145 = vmatpush.msra.mxu2 %v436_v19  ;;  %452 = vmatpush.msra.mxu1 %v435_v20 }
  0x23   : > { %1148 = vmatpush.msrb.mxu3 %v435_v20  ;;  %810 = vperm.xlu1 %1213, %v788_v56  }
  0x24   : > { %1147 = vmatpush.msra.mxu2 %v435_v20  ;;  %453 = vmatpush.msra.mxu1 %v434_v21  ;;  %v799_v20 = vld [vmem:[%s1549_s14 + $0x60] sm:$0xff] }
  0x25   : > { %1150 = vmatpush.msrb.mxu3 %v434_v21  ;;  %805 = vperm.xlu2 %1212, %v787_v2  }
  0x26   : > { %1149 = vmatpush.msra.mxu2 %v434_v21  ;;  %454 = vmatpush.msra.mxu1 %v433_v23 }
  0x27   : > { %1114 = vmatmul.msk.f32.gmra.mxu0 %vm296_vm0, %v277_v5  ;;  %1124 = vmatmul.msk.f32.gmra.mxu3 %vm296_vm0, %v287_v6  ;;  %v797_v6 = vld [vmem:[%s1549_s14 + $0x50] sm:$0xff] }
  0x28   : > { %1152 = vmatpush.msrb.mxu3 %v433_v23  ;;  %1151 = vmatpush.msra.mxu2 %v433_v23 }
  0x29   : > { %455 = vmatpush.msra.mxu1 %v432_v24  ;;  %840 = vperm.xlu0 %1214, %v794_v63  }
  0x2a   : > { %1154 = vmatpush.msrb.mxu3 %v432_v24  ;;  %1153 = vmatpush.msra.mxu2 %v432_v24 }
  0x2b   : > { %456 = vmatpush.msra.mxu1 %v431_v25  ;;  %825 = vperm.xlu1 %1213, %v791_v0  }
  0x2c   : > { %1156 = vmatpush.msrb.mxu3 %v431_v25  ;;  %1155 = vmatpush.msra.mxu2 %v431_v25  ;;  %v802_v25 = vld [vmem:[%s1549_s14 + $0x78] sm:$0xff] }
  0x2d   : > { %457 = vmatpush.msra.mxu1 %v430_v26 }
  0x2e   : > { %1158 = vmatpush.msrb.mxu3 %v430_v26  ;;  %1157 = vmatpush.msra.mxu2 %v430_v26 }
  0x2f   : > { %1115 = vmatmul.msk.f32.gmra.mxu0 %vm296_vm0, %v278_v7  ;;  %1125 = vmatmul.msk.f32.gmra.mxu3 %vm296_vm0, %v288_v8 }
  0x30   : > { %458 = vmatpush.msra.mxu1 %v429_v28  ;;  %1160 = vmatpush.msrb.mxu3 %v429_v28 }
  0x31   : > { %1159 = vmatpush.msra.mxu2 %v429_v28  ;;  %855 = vperm.xlu0 %1214, %v797_v6  }
  0x32   : > { %459 = vmatpush.msra.mxu1 %v428_v30  ;;  %1162 = vmatpush.msrb.mxu3 %v428_v30 }
  0x33   : > { %1161 = vmatpush.msra.mxu2 %v428_v30  ;;  %v801_v30 = vld [vmem:[%s1549_s14 + $0x70] sm:$0xff] }
  0x34   : > { %460 = vmatpush.msra.mxu1 %v427_v31  ;;  %1164 = vmatpush.msrb.mxu3 %v427_v31 }
  0x35   : > { %1163 = vmatpush.msra.mxu2 %v427_v31 }
  0x36   : > { %461 = vmatpush.msra.mxu1 %v426_v32  ;;  %1166 = vmatpush.msrb.mxu3 %v426_v32 }
  0x37   : > { %1116 = vmatmul.msk.f32.gmra.mxu0 %vm296_vm0, %v279_v9  ;;  %1126 = vmatmul.msk.f32.gmra.mxu3 %vm296_vm0, %v289_v10  ;;  %v793_v9 = vld [vmem:[%s1549_s14 + $0x30] sm:$0xff] }
  0x38   : > { %1165 = vmatpush.msra.mxu2 %v426_v32  ;;  %835 = vperm.xlu1 %1213, %v793_v9  }
  0x39   : > { %870 = vperm.xlu0 %1214, %v800_v13  }
  0x3f   : > { %1117 = vmatmul.msk.f32.gmra.mxu0 %vm296_vm0, %v280_v11  ;;  %1127 = vmatmul.msk.f32.gmra.mxu3 %vm296_vm0, %v290_v12  ;;  %v790_v11 = vld [vmem:[%s1549_s14 + $0x18] sm:$0xff] }
  0x40   : > { %820 = vperm.xlu2 %1212, %v790_v11   ;;  %850 = vperm.xlu1 %1213, %v796_v15  }
  0x47   : > { %1118 = vmatmul.msk.f32.gmra.mxu0 %vm296_vm0, %v281_v17  ;;  %v792_v17 = vld [vmem:[%s1549_s14 + $0x28] sm:$0xff] }
  0x48   : > { %830 = vperm.xlu2 %1212, %v792_v17   ;;  %865 = vperm.xlu1 %1213, %v799_v20  }
  0x4f   : > { %1119 = vmatmul.msk.f32.gmra.mxu0 %vm296_vm0, %v282_v22  ;;  %v795_v22 = vld [vmem:[%s1549_s14 + $0x40] sm:$0xff] }
  0x50   : > { %845 = vperm.xlu2 %1212, %v795_v22   ;;  %880 = vperm.xlu1 %1213, %v802_v25  }
  0x57   : > { %1120 = vmatmul.msk.f32.gmra.mxu0 %vm296_vm0, %v283_v27  ;;  %v798_v27 = vld [vmem:[%s1549_s14 + $0x58] sm:$0xff]  ;;  %s1297_s14 = scalar_lea.hbm %s1296_s13, 128 }
  0x58   : > { %860 = vperm.xlu2 %1212, %v798_v27   ;;  %p1298_p11 = scmp.ne.s32.totalorder %s1296_s13, %s1297_s14 }
  0x5a   : > { %p1299_p12 = pnand %p1298_p11, %p1424_p5 }
  0x5c   : > { %p1300_p13 = pneg %p1299_p12 }
  0x5f   : > { %1121 = vmatmul.msk.f32.gmra.mxu0 %vm296_vm0, %v284_v29 }
  0x60   : > { %875 = vperm.xlu2 %1212, %v801_v30  }
  0x94   : > { %v362_v34 = vpop.f32.mrf.mxu0 }
  0x95   : > { %v363_v35 = vadd.f32 %v1531_v33, %v362_v34 }
  0x97   : > { %v410_v36 = vmax.f32 %v363_v35, 0.0 }
  0x99   : > { %462 = vmatmul.f32.vlgmr.msra.gmra.mxu1 %v410_v36  ;;  %v1216_v36 = vld [vmem:[%s2133_s4] ss:$0 sm:$0xff] }
  0x9a   : > { %v1534_v37 = vpop.f32.mrf.mxu3 }
  0x9b   : > { %v393_v28 = vadd.f32 %v1531_v33, %v1534_v37 }
  0x9c   : > { %v365_v38 = vpop.f32.mrf.mxu0 }
  0x9d   : > { %v366_v39 = vadd.f32 %v1531_v33, %v365_v38  ;;  %v420_v29 = vmax.f32 %v393_v28, 0.0 }
  0x9f   : > { %v411_v40 = vmax.f32 %v366_v39, 0.0 }
  0xa1   : > { %465 = vmatmul.f32.gmra.mxu1 %v411_v40 }
  0xa2   : > { %v1537_v41 = vpop.f32.mrf.mxu3 }
  0xa3   : > { %v396_v31 = vadd.f32 %v1531_v33, %v1537_v41 }
  0xa4   : > { %v368_v42 = vpop.f32.mrf.mxu0 }
  0xa5   : > { %v369_v43 = vadd.f32 %v1531_v33, %v368_v42  ;;  %v421_v32 = vmax.f32 %v396_v31, 0.0 }
  0xa7   : > { %v412_v44 = vmax.f32 %v369_v43, 0.0 }
  0xa9   : > { %468 = vmatmul.f32.gmra.mxu1 %v412_v44 }
  0xaa   : > { %v1540_v45 = vpop.f32.mrf.mxu3 }
  0xab   : > { %v399_v34 = vadd.f32 %v1531_v33, %v1540_v45 }
  0xac   : > { %v371_v46 = vpop.f32.mrf.mxu0 }
  0xad   : > { %v372_v47 = vadd.f32 %v1531_v33, %v371_v46  ;;  %v422_v35 = vmax.f32 %v399_v34, 0.0 }
  0xaf   : > { %v413_v48 = vmax.f32 %v372_v47, 0.0 }
  0xb1   : > { %471 = vmatmul.f32.gmra.mxu1 %v413_v48 }
  0xb2   : > { %v401_v49 = vpop.f32.mrf.mxu3 }
  0xb3   : > { %v402_v50 = vadd.f32 %v1531_v33, %v401_v49 }
  0xb4   : > { %v374_v51 = vpop.f32.mrf.mxu0 }
  0xb5   : > { %v423_v52 = vmax.f32 %v402_v50, 0.0  ;;  %v375_v53 = vadd.f32 %v1531_v33, %v374_v51 }
  0xb7   : > { %v414_v57 = vmax.f32 %v375_v53, 0.0  ;;  %501 = vmatmul.f32.vlgmr.msrb.gmra.mxu3 %v423_v52 }
  0xb9   : > { %474 = vmatmul.f32.gmra.mxu1 %v414_v57 }
  0xba   : > { %v404_v58 = vpop.f32.mrf.mxu3 }
  0xbb   : > { %v405_v59 = vadd.f32 %v1531_v33, %v404_v58 }
  0xbc   : > { %v377_v60 = vpop.f32.mrf.mxu0 }
  0xbd   : > { %v424_v61 = vmax.f32 %v405_v59, 0.0  ;;  %v378_v62 = vadd.f32 %v1531_v33, %v377_v60  ;;  %v1617_v60 = vpop.permute.xlu1 %810 }
  0xbf   : > { %v415_v1 = vmax.f32 %v378_v62, 0.0  ;;  %504 = vmatmul.f32.gmra.mxu3 %v424_v61  ;;  %v1619_v62 = vpop.permute.xlu0 %815 }
  0xc1   : > { %477 = vmatmul.f32.gmra.mxu1 %v415_v1 }
  0xc2   : > { %v407_v3 = vpop.f32.mrf.mxu3 }
  0xc3   : > { %v408_v4 = vadd.f32 %v1531_v33, %v407_v3 }
  0xc4   : > { %v380_v5 = vpop.f32.mrf.mxu0 }
  0xc5   : > { %v425_v7 = vmax.f32 %v408_v4, 0.0  ;;  %v381_v8 = vadd.f32 %v1531_v33, %v380_v5  ;;  %v1624_v0 = vpop.permute.xlu1 %825  ;;  %v1631_v4 = vpop.permute.xlu2 %805 }
  0xc7   : > { %v416_v10 = vmax.f32 %v381_v8, 0.0  ;;  %507 = vmatmul.f32.gmra.mxu3 %v425_v7  ;;  %v1628_v3 = vpop.permute.xlu0 %840 }
  0xc9   : > { %480 = vmatmul.f32.vlgmr.msra.gmra.mxu2 %v416_v10 }
  0xcc   : > { %v383_v12 = vpop.f32.mrf.mxu0 }
  0xcd   : > { %v384_v14 = vadd.f32 %v1531_v33, %v383_v12  ;;  %v1635_v7 = vpop.permute.xlu1 %835  ;;  %v1640_v9 = vpop.permute.xlu2 %820 }
  0xcf   : > { %v417_v16 = vmax.f32 %v384_v14, 0.0  ;;  %v1638_v8 = vpop.permute.xlu0 %855 }
  0xd1   : > { %483 = vmatmul.f32.gmra.mxu2 %v417_v16 }
  0xd4   : > { %v386_v18 = vpop.f32.mrf.mxu0 }
  0xd5   : > { %v387_v19 = vadd.f32 %v1531_v33, %v386_v18  ;;  %v1645_v12 = vpop.permute.xlu1 %850  ;;  %v1649_v14 = vpop.permute.xlu2 %830 }
  0xd7   : > { %v418_v21 = vmax.f32 %v387_v19, 0.0  ;;  %v1647_v13 = vpop.permute.xlu0 %870 }
  0xd9   : > { %486 = vmatmul.f32.gmra.mxu2 %v418_v21 }
  0xdc   : > { %v389_v23 = vpop.f32.mrf.mxu0 }
  0xdd   : > { %v390_v24 = vadd.f32 %v1531_v33, %v389_v23  ;;  %v1651_v15 = vpop.permute.xlu1 %865  ;;  %v1653_v19 = vpop.permute.xlu2 %845 }
  0xdf   : > { %v419_v26 = vmax.f32 %v390_v24, 0.0 }
  0xe1   : > { %489 = vmatmul.f32.gmra.mxu2 %v419_v26 }
  0xe5   : > { %v1655_v20 = vpop.permute.xlu1 %880  ;;  %v1661_v25 = vpop.permute.xlu2 %860 }
  0xe9   : > { %492 = vmatmul.f32.gmra.mxu2 %v420_v29 }
  0xed   : > { %v1667_v30 = vpop.permute.xlu2 %875 }
  0xf1   : > { %495 = vmatmul.f32.gmra.mxu2 %v421_v32 }
  0xf9   : > { %498 = vmatmul.f32.gmra.mxu2 %v422_v35 }
 0x116   : > { %v463_v38 = vpop.f32.mrf.mxu1 }
 0x117   : > { %v464_v37 = vadd.f32 %v1216_v36, %v463_v38 }
 0x119   : > { %511 = vmax.xlane.f32.xlu0 %v464_v37 }
 0x11e   : > { %v466_v39 = vpop.f32.mrf.mxu1 }
 0x11f   : > { %v1584_v40 = vadd.f32 %v1216_v36, %v466_v39 }
 0x121   : > { %513 = vmax.xlane.f32.xlu0 %v1584_v40 }
 0x126   : > { %v469_v41 = vpop.f32.mrf.mxu1 }
 0x127   : > { %v1587_v42 = vadd.f32 %v1216_v36, %v469_v41 }
 0x129   : > { %515 = vmax.xlane.f32.xlu1 %v1587_v42 }
 0x12e   : > { %v472_v33 = vpop.f32.mrf.mxu1 }
 0x12f   : > { %v1590_v43 = vadd.f32 %v1216_v36, %v472_v33 }
 0x131   : > { %517 = vmax.xlane.f32.xlu1 %v1590_v43 }
 0x136   : > { %v475_v44 = vpop.f32.mrf.mxu1 }
 0x137   : > { %v1593_v45 = vadd.f32 %v1216_v36, %v475_v44 }
 0x139   : > { %519 = vmax.xlane.f32.xlu2 %v1593_v45 }
 0x13a   : > { %v502_v46 = vpop.f32.mrf.mxu3 }
 0x13b   : > { %v1596_v47 = vadd.f32 %v1216_v36, %v502_v46 }
 0x13d   : > { %537 = vmax.xlane.f32.xlu1 %v1596_v47 }
 0x13e   : > { %v478_v48 = vpop.f32.mrf.mxu1 }
 0x13f   : > { %v1599_v49 = vadd.f32 %v1216_v36, %v478_v48 }
 0x141   : > { %521 = vmax.xlane.f32.xlu2 %v1599_v49 }
 0x142   : > { %v505_v50 = vpop.f32.mrf.mxu3 }
 0x143   : > { %v1602_v51 = vadd.f32 %v1216_v36, %v505_v50 }
 0x149   : > { %539 = vmax.xlane.f32.xlu2 %v1602_v51 }
 0x14a   : > { %v508_v52 = vpop.f32.mrf.mxu3 }
 0x14b   : > { %v1605_v53 = vadd.f32 %v1216_v36, %v508_v52 }
 0x14c   : > { %v481_v54 = vpop.f32.mrf.mxu2 }
 0x14d   : > { %541 = vmax.xlane.f32.xlu0 %v1605_v53  ;;  %v1608_v55 = vadd.f32 %v1216_v36, %v481_v54 }
 0x154   : > { %v484_v56 = vpop.f32.mrf.mxu2 }
 0x155   : > { %v1610_v57 = vadd.f32 %v1216_v36, %v484_v56  ;;  %523 = vmax.xlane.f32.xlu0 %v1608_v55 }
 0x157   : > { %525 = vmax.xlane.f32.xlu1 %v1610_v57 }
 0x15c   : > { %v487_v58 = vpop.f32.mrf.mxu2 }
 0x15d   : > { %v1614_v59 = vadd.f32 %v1216_v36, %v487_v58 }
 0x15f   : > { %527 = vmax.xlane.f32.xlu2 %v1614_v59 }
 0x164   : > { %v490_v61 = vpop.f32.mrf.mxu2 }
 0x165   : > { %v1621_v63 = vadd.f32 %v1216_v36, %v490_v61 }
 0x167   : > { %529 = vmax.xlane.f32.xlu0 %v1621_v63 }
 0x16c   : > { %v493_v1 = vpop.f32.mrf.mxu2 }
 0x16d   : > { %v1626_v2 = vadd.f32 %v1216_v36, %v493_v1 }
 0x16f   : > { %531 = vmax.xlane.f32.xlu1 %v1626_v2 }
 0x174   : > { %v496_v5 = vpop.f32.mrf.mxu2 }
 0x175   : > { %v1633_v6 = vadd.f32 %v1216_v36, %v496_v5 }
 0x177   : > { %533 = vmax.xlane.f32.xlu2 %v1633_v6 }
 0x17c   : > { %v499_v10 = vpop.f32.mrf.mxu2 }
 0x17d   : > { %v1642_v11 = vadd.f32 %v1216_v36, %v499_v10 }
 0x17f   : > { %535 = vmax.xlane.f32.xlu0 %v1642_v11 }
 0x18c   : > { %v512_v16 = vpop.xlane.xlu0 %511 }
 0x18d   : > { %v543_v17 = vsub.f32 %v464_v37, %v512_v16 }
 0x18f   : > { %v559_v18 = vmul.f32 1.442695, %v543_v17 }
 0x191   : > { %1217 = vpow2.f32 %v559_v18 }
 0x194   : > { %v514_v21 = vpop.xlane.xlu0 %513 }
 0x195   : > { %v544_v22 = vsub.f32 %v1584_v40, %v514_v21 }
 0x197   : > { %v1658_v23 = vpop.eup %1217  ;;  %v561_v24 = vmul.f32 1.442695, %v544_v22 }
 0x198   : > { %591 = vadd.xlane.f32.xlu1 %v1658_v23 }
 0x199   : > { %1219 = vpow2.f32 %v561_v24 }
 0x19c   : > { %v516_v26 = vpop.xlane.xlu1 %515 }
 0x19d   : > { %v545_v27 = vsub.f32 %v1587_v42, %v516_v26 }
 0x19f   : > { %v1664_v28 = vpop.eup %1219  ;;  %v563_v29 = vmul.f32 1.442695, %v545_v27 }
 0x1a0   : > { %593 = vadd.xlane.f32.xlu2 %v1664_v28 }
 0x1a1   : > { %1221 = vpow2.f32 %v563_v29 }
 0x1a4   : > { %v518_v31 = vpop.xlane.xlu1 %517 }
 0x1a5   : > { %v546_v32 = vsub.f32 %v1590_v43, %v518_v31 }
 0x1a7   : > { %v1670_v34 = vpop.eup %1221  ;;  %v565_v35 = vmul.f32 1.442695, %v546_v32 }
 0x1a8   : > { %595 = vadd.xlane.f32.xlu0 %v1670_v34 }
 0x1a9   : > { %1223 = vpow2.f32 %v565_v35 }
 0x1ac   : > { %v520_v36 = vpop.xlane.xlu2 %519 }
 0x1ad   : > { %v547_v38 = vsub.f32 %v1593_v45, %v520_v36 }
 0x1af   : > { %v1674_v37 = vpop.eup %1223  ;;  %v567_v39 = vmul.f32 1.442695, %v547_v38 }
 0x1b0   : > { %v538_v40 = vpop.xlane.xlu1 %537  ;;  %597 = vadd.xlane.f32.xlu1 %v1674_v37 }
 0x1b1   : > { %1225 = vpow2.f32 %v567_v39  ;;  %v556_v41 = vsub.f32 %v1596_v47, %v538_v40 }
 0x1b3   : > { %v585_v42 = vmul.f32 1.442695, %v556_v41 }
 0x1b4   : > { %v522_v33 = vpop.xlane.xlu2 %521 }
 0x1b5   : > { %v548_v43 = vsub.f32 %v1599_v49, %v522_v33  ;;  %1227 = vpow2.f32 %v585_v42 }
 0x1b7   : > { %v1679_v44 = vpop.eup %1225  ;;  %v569_v46 = vmul.f32 1.442695, %v548_v43 }
 0x1b8   : > { %599 = vadd.xlane.f32.xlu2 %v1679_v44 }
 0x1b9   : > { %1229 = vpow2.f32 %v569_v46 }
 0x1bb   : > { %v1683_v50 = vpop.eup %1227 }
 0x1bc   : > { %v540_v45 = vpop.xlane.xlu2 %539 }
 0x1bd   : > { %v557_v48 = vsub.f32 %v1602_v51, %v540_v45 }
 0x1bf   : > { %v1685_v52 = vpop.eup %1229  ;;  %v587_v54 = vmul.f32 1.442695, %v557_v48 }
 0x1c0   : > { %601 = vadd.xlane.f32.xlu0 %v1685_v52  ;;  %617 = vadd.xlane.f32.xlu2 %v1683_v50  ;;  %v542_v47 = vpop.xlane.xlu0 %541 }
 0x1c1   : > { %1231 = vpow2.f32 %v587_v54  ;;  %v558_v49 = vsub.f32 %v1605_v53, %v542_v47 }
 0x1c3   : > { %v589_v56 = vmul.f32 1.442695, %v558_v49 }
 0x1c5   : > { %1233 = vpow2.f32 %v589_v56 }
 0x1c7   : > { %v1690_v58 = vpop.eup %1231 }
 0x1c8   : > { %619 = vadd.xlane.f32.xlu0 %v1690_v58  ;;  %v524_v51 = vpop.xlane.xlu0 %523 }
 0x1c9   : > { %v549_v61 = vsub.f32 %v1608_v55, %v524_v51 }
 0x1ca   : > { %v526_v1 = vpop.xlane.xlu1 %525 }
 0x1cb   : > { %v1694_v5 = vpop.eup %1233  ;;  %v571_v10 = vmul.f32 1.442695, %v549_v61  ;;  %v550_v16 = vsub.f32 %v1610_v57, %v526_v1 }
 0x1cc   : > { %621 = vadd.xlane.f32.xlu1 %v1694_v5 }
 0x1cd   : > { %1235 = vpow2.f32 %v571_v10  ;;  %v573_v17 = vmul.f32 1.442695, %v550_v16 }
 0x1cf   : > { %1237 = vpow2.f32 %v573_v17 }
 0x1d2   : > { %v528_v53 = vpop.xlane.xlu2 %527 }
 0x1d3   : > { %v1698_v18 = vpop.eup %1235  ;;  %v551_v21 = vsub.f32 %v1614_v59, %v528_v53 }
 0x1d4   : > { %603 = vadd.xlane.f32.xlu1 %v1698_v18 }
 0x1d5   : > { %v1702_v22 = vpop.eup %1237  ;;  %v575_v55 = vmul.f32 1.442695, %v551_v21 }
 0x1d6   : > { %605 = vadd.xlane.f32.xlu2 %v1702_v22 }
 0x1d7   : > { %1239 = vpow2.f32 %v575_v55 }
 0x1da   : > { %v530_v24 = vpop.xlane.xlu0 %529 }
 0x1db   : > { %v552_v57 = vsub.f32 %v1621_v63, %v530_v24 }
 0x1dd   : > { %v1706_v26 = vpop.eup %1239  ;;  %v577_v27 = vmul.f32 1.442695, %v552_v57 }
 0x1de   : > { %607 = vadd.xlane.f32.xlu0 %v1706_v26 }
 0x1df   : > { %1241 = vpow2.f32 %v577_v27 }
 0x1e2   : > { %v532_v29 = vpop.xlane.xlu1 %531 }
 0x1e3   : > { %v553_v59 = vsub.f32 %v1626_v2, %v532_v29 }
 0x1e5   : > { %v1710_v31 = vpop.eup %1241  ;;  %v579_v32 = vmul.f32 1.442695, %v553_v59 }
 0x1e6   : > { %609 = vadd.xlane.f32.xlu1 %v1710_v31 }
 0x1e7   : > { %1243 = vpow2.f32 %v579_v32 }
 0x1ea   : > { %v534_v35 = vpop.xlane.xlu2 %533 }
 0x1eb   : > { %v554_v36 = vsub.f32 %v1633_v6, %v534_v35 }
 0x1ed   : > { %v1714_v38 = vpop.eup %1243  ;;  %v581_v63 = vmul.f32 1.442695, %v554_v36 }
 0x1ee   : > { %611 = vadd.xlane.f32.xlu2 %v1714_v38 }
 0x1ef   : > { %1245 = vpow2.f32 %v581_v63 }
 0x1f2   : > { %v536_v39 = vpop.xlane.xlu0 %535 }
 0x1f3   : > { %v555_v40 = vsub.f32 %v1642_v11, %v536_v39 }
 0x1f5   : > { %v1718_v41 = vpop.eup %1245  ;;  %v583_v2 = vmul.f32 1.442695, %v555_v40 }
 0x1f6   : > { %613 = vadd.xlane.f32.xlu0 %v1718_v41 }
 0x1f7   : > { %1247 = vpow2.f32 %v583_v2 }
 0x1fd   : > { %v1721_v42 = vpop.eup %1247 }
 0x1fe   : > { %615 = vadd.xlane.f32.xlu1 %v1721_v42 }
 0x20b   : > { %v592_v6 = vpop.xlane.xlu1 %591 }
 0x20c   : > { %1249 = vrcp.f32 %v592_v6 }
 0x212   : > { %v1250_v33 = vpop.eup %1249 }
 0x213   : > { %v594_v43 = vpop.xlane.xlu2 %593  ;;  %v1725_v46 = vmul.f32 %v1250_v33, %v1658_v23 }
 0x214   : > { %1251 = vrcp.f32 %v594_v43 }
 0x215   : > { %657 = vrot.lane.b32.xlu2 %v1725_v46, %s1346_s16 }
 0x21a   : > { %v1252_v11 = vpop.eup %1251 }
 0x21b   : > { %v596_v45 = vpop.xlane.xlu0 %595  ;;  %v1730_v48 = vmul.f32 %v1252_v11, %v1664_v28 }
 0x21c   : > { %1253 = vrcp.f32 %v596_v45 }
 0x21d   : > { %659 = vrot.lane.b32.xlu0 %v1730_v48, %s1346_s16 }
 0x222   : > { %v1254_v54 = vpop.eup %1253 }
 0x223   : > { %v598_v47 = vpop.xlane.xlu1 %597  ;;  %v1735_v49 = vmul.f32 %v1254_v54, %v1670_v34 }
 0x224   : > { %1255 = vrcp.f32 %v598_v47 }
 0x225   : > { %661 = vrot.lane.b32.xlu1 %v1735_v49, %s1346_s16 }
 0x22a   : > { %v1256_v23 = vpop.eup %1255 }
 0x22b   : > { %v600_v56 = vpop.xlane.xlu2 %599  ;;  %v1740_v51 = vmul.f32 %v1256_v23, %v1674_v37 }
 0x22c   : > { %1257 = vrcp.f32 %v600_v56 }
 0x22d   : > { %663 = vrot.lane.b32.xlu2 %v1740_v51, %s1346_s16 }
 0x232   : > { %v1258_v28 = vpop.eup %1257 }
 0x233   : > { %v618_v61 = vpop.xlane.xlu2 %617  ;;  %v602_v1 = vpop.xlane.xlu0 %601  ;;  %v1745_v10 = vmul.f32 %v1258_v28, %v1679_v44 }
 0x234   : > { %1259 = vrcp.f32 %v618_v61 }
 0x235   : > { %1261 = vrcp.f32 %v602_v1  ;;  %665 = vrot.lane.b32.xlu0 %v1745_v10, %s1346_s16 }
 0x23a   : > { %v1260_v34 = vpop.eup %1259 }
 0x23b   : > { %v1262_v16 = vpop.eup %1261  ;;  %v620_v17 = vpop.xlane.xlu0 %619  ;;  %v1750_v37 = vmul.f32 %v1260_v34, %v1683_v50 }
 0x23c   : > { %1263 = vrcp.f32 %v620_v17  ;;  %v1753_v53 = vmul.f32 %v1262_v16, %v1685_v52 }
 0x23d   : > { %683 = vrot.lane.b32.xlu0 %v1750_v37, %s1346_s16 }
 0x23e   : > { %667 = vrot.lane.b32.xlu2 %v1753_v53, %s1346_s16 }
 0x23f   : > { %v622_v44 = vpop.xlane.xlu1 %621 }
 0x240   : > { %1265 = vrcp.f32 %v622_v44 }
 0x242   : > { %v1264_v21 = vpop.eup %1263 }
 0x243   : > { %v1760_v55 = vmul.f32 %v1264_v21, %v1690_v58 }
 0x246   : > { %v1266_v24 = vpop.eup %1265  ;;  %685 = vrot.lane.b32.xlu2 %v1760_v55, %s1346_s16 }
 0x247   : > { %v604_v50 = vpop.xlane.xlu1 %603  ;;  %v1765_v52 = vmul.f32 %v1266_v24, %v1694_v5 }
 0x248   : > { %1267 = vrcp.f32 %v604_v50 }
 0x249   : > { %v606_v57 = vpop.xlane.xlu2 %605  ;;  %687 = vrot.lane.b32.xlu1 %v1765_v52, %s1346_s16 }
 0x24a   : > { %1269 = vrcp.f32 %v606_v57 }
 0x24e   : > { %v1268_v27 = vpop.eup %1267 }
 0x24f   : > { %v1770_v29 = vmul.f32 %v1268_v27, %v1698_v18 }
 0x250   : > { %v1270_v58 = vpop.eup %1269 }
 0x251   : > { %669 = vrot.lane.b32.xlu1 %v1770_v29, %s1346_s16  ;;  %v608_v59 = vpop.xlane.xlu0 %607  ;;  %v1775_v32 = vmul.f32 %v1270_v58, %v1702_v22  ;;  %v655_v22 = vlaneseq }
 0x252   : > { %1271 = vrcp.f32 %v608_v59 }
 0x253   : > { %671 = vrot.lane.b32.xlu0 %v1775_v32, %s1346_s16 }
 0x258   : > { %v1272_v5 = vpop.eup %1271 }
 0x259   : > { %v610_v35 = vpop.xlane.xlu1 %609  ;;  %v1780_v36 = vmul.f32 %v1272_v5, %v1706_v26  ;;  %v1792_v26 = vand.u32 127, %v655_v22 }
 0x25a   : > { %1273 = vrcp.f32 %v610_v35 }
 0x25b   : > { %673 = vrot.lane.b32.xlu2 %v1780_v36, %s1346_s16  ;;  %vm689_vm1 = vcmp.ge.s32.totalorder %v1792_v26, 1  ;;  %vm754_vm2 = vcmp.ge.s32.totalorder %v1792_v26, 2  ;;  %vm899_vm4 = vcmp.lt.s32.totalorder %v1792_v26, 4 }
 0x260   : > { %v1274_v18 = vpop.eup %1273 }
 0x261   : > { %v612_v63 = vpop.xlane.xlu2 %611  ;;  %v1785_v39 = vmul.f32 %v1274_v18, %v1710_v31 }
 0x262   : > { %1275 = vrcp.f32 %v612_v63 }
 0x263   : > { %675 = vrot.lane.b32.xlu1 %v1785_v39, %s1346_s16 }
 0x268   : > { %v1276_v40 = vpop.eup %1275 }
 0x269   : > { %v614_v2 = vpop.xlane.xlu0 %613  ;;  %v1790_v6 = vmul.f32 %v1276_v40, %v1714_v38 }
 0x26a   : > { %1277 = vrcp.f32 %v614_v2 }
 0x26b   : > { %677 = vrot.lane.b32.xlu0 %v1790_v6, %s1346_s16 }
 0x26f   : > { %v658_v31 = vpop.permute.xlu2 %657 }
 0x270   : > { %v1278_v33 = vpop.eup %1277  ;;  %v690_v43 = vsel %vm689_vm1, %v658_v31, 0.0 }
 0x271   : > { %v1800_v11 = vadd.f32 %v690_v43, %v1725_v46  ;;  %v616_v45 = vpop.xlane.xlu1 %615  ;;  %v1803_v38 = vmul.f32 %v1278_v33, %v1718_v41 }
 0x272   : > { %1279 = vrcp.f32 %v616_v45 }
 0x273   : > { %722 = vrot.lane.b32.xlu0 %v1800_v11, %s1347_s17  ;;  %679 = vrot.lane.b32.xlu2 %v1803_v38, %s1346_s16 }
 0x278   : > { %v1280_v54 = vpop.eup %1279 }
 0x279   : > { %v1810_v47 = vmul.f32 %v1280_v54, %v1721_v42 }
 0x27b   : > { %681 = vrot.lane.b32.xlu1 %v1810_v47, %s1346_s16  ;;  %s1301_s16 = scalar_lea.hbm %s2135_s6, 256 }
 0x27c   : > { %p1303_p1 = scmp.lt.s32.totalorder %s1301_s16, %s1297_s14 }
 0x27e   : > { %p1304_p2 = por %p1303_p1, %p1302_p0 }
 0x280   : > { %p1305_p3 = pnand %p1304_p2, %p1300_p13 }
 0x287   : > { %v664_v23 = vpop.permute.xlu2 %663 }
 0x288   : > { %v693_v41 = vsel %vm689_vm1, %v664_v23, 0.0 }
 0x289   : > { %v1817_v56 = vadd.f32 %v693_v41, %v1740_v51 }
 0x28b   : > { %728 = vrot.lane.b32.xlu0 %v1817_v56, %s1347_s17 }
 0x28f   : > { %v660_v28 = vpop.permute.xlu0 %659 }
 0x290   : > { %v691_v61 = vsel %vm689_vm1, %v660_v28, 0.0 }
 0x291   : > { %v707_v42 = vadd.f32 %v691_v61, %v1730_v48 }
 0x293   : > { %724 = vrot.lane.b32.xlu2 %v707_v42, %s1347_s17 }
 0x297   : > { %v662_v1 = vpop.permute.xlu1 %661 }
 0x298   : > { %v692_v34 = vsel %vm689_vm1, %v662_v1, 0.0  ;;  %v668_v17 = vpop.permute.xlu2 %667 }
 0x299   : > { %v1828_v16 = vadd.f32 %v692_v34, %v1735_v49  ;;  %v695_v44 = vsel %vm689_vm1, %v668_v17, 0.0 }
 0x29a   : > { %v1835_v21 = vadd.f32 %v695_v44, %v1753_v53 }
 0x29b   : > { %726 = vrot.lane.b32.xlu1 %v1828_v16, %s1347_s17 }
 0x2a0   : > { %v686_v24 = vpop.permute.xlu2 %685 }
 0x2a1   : > { %v704_v50 = vsel %vm689_vm1, %v686_v24, 0.0 }
 0x2a2   : > { %v1844_v58 = vadd.f32 %v704_v50, %v1760_v55 }
 0x2a3   : > { %732 = vrot.lane.b32.xlu1 %v1835_v21, %s1347_s17 }
 0x2a7   : > { %v666_v57 = vpop.permute.xlu0 %665 }
 0x2a8   : > { %v694_v27 = vsel %vm689_vm1, %v666_v57, 0.0 }
 0x2a9   : > { %v710_v59 = vadd.f32 %v694_v27, %v1745_v10 }
 0x2ab   : > { %750 = vrot.lane.b32.xlu1 %v1844_v58, %s1347_s17  ;;  %730 = vrot.lane.b32.xlu2 %v710_v59, %s1347_s17 }
 0x2af   : > { %v684_v5 = vpop.permute.xlu0 %683 }
 0x2b0   : > { %v703_v35 = vsel %vm689_vm1, %v684_v5, 0.0 }
 0x2b1   : > { %v1853_v18 = vadd.f32 %v703_v35, %v1750_v37 }
 0x2b3   : > { %748 = vrot.lane.b32.xlu2 %v1853_v18, %s1347_s17 }
 0x2b5   : > { %v674_v63 = vpop.permute.xlu2 %673 }
 0x2b6   : > { %v698_v22 = vsel %vm689_vm1, %v674_v63, 0.0 }
 0x2b7   : > { %v1860_v40 = vadd.f32 %v698_v22, %v1780_v36 }
 0x2b9   : > { %738 = vrot.lane.b32.xlu1 %v1860_v40, %s1347_s17 }
 0x2bb   : > { %v688_v2 = vpop.permute.xlu1 %687 }
 0x2bc   : > { %v705_v31 = vsel %vm689_vm1, %v688_v2, 0.0 }
 0x2bd   : > { %v1867_v33 = vadd.f32 %v705_v31, %v1765_v52 }
 0x2bf   : > { %752 = vrot.lane.b32.xlu0 %v1867_v33, %s1347_s17 }
 0x2c3   : > { %v670_v43 = vpop.permute.xlu1 %669 }
 0x2c4   : > { %v696_v45 = vsel %vm689_vm1, %v670_v43, 0.0 }
 0x2c5   : > { %v1874_v54 = vadd.f32 %v696_v45, %v1770_v29  ;;  %v672_v23 = vpop.permute.xlu0 %671 }
 0x2c6   : > { %v697_v41 = vsel %vm689_vm1, %v672_v23, 0.0 }
 0x2c7   : > { %v1879_v28 = vadd.f32 %v697_v41, %v1775_v32  ;;  %734 = vrot.lane.b32.xlu0 %v1874_v54, %s1347_s17  ;;  %v1348_v41 = vmov 0.0  }
 0x2c9   : > { %736 = vrot.lane.b32.xlu2 %v1879_v28, %s1347_s17 }
 0x2cd   : > { %v680_v61 = vpop.permute.xlu2 %679 }
 0x2ce   : > { %v701_v1 = vsel %vm689_vm1, %v680_v61, 0.0 }
 0x2cf   : > { %v1888_v34 = vadd.f32 %v701_v1, %v1803_v38 }
 0x2d1   : > { %744 = vrot.lane.b32.xlu1 %v1888_v34, %s1347_s17 }
 0x2d5   : > { %v676_v17 = vpop.permute.xlu1 %675 }
 0x2d6   : > { %v699_v44 = vsel %vm689_vm1, %v676_v17, 0.0 }
 0x2d7   : > { %v1895_v24 = vadd.f32 %v699_v44, %v1785_v39 }
 0x2d9   : > { %740 = vrot.lane.b32.xlu0 %v1895_v24, %s1347_s17 }
 0x2dd   : > { %v678_v50 = vpop.permute.xlu0 %677 }
 0x2de   : > { %v700_v57 = vsel %vm689_vm1, %v678_v50, 0.0 }
 0x2df   : > { %v1902_v27 = vadd.f32 %v700_v57, %v1790_v6 }
 0x2e1   : > { %742 = vrot.lane.b32.xlu2 %v1902_v27, %s1347_s17 }
 0x2e5   : > { %v723_v1 = vpop.permute.xlu0 %722 }
 0x2ed   : > { %v682_v5 = vpop.permute.xlu1 %681  ;;  %v725_v22 = vpop.permute.xlu2 %724 }
 0x2ee   : > { %v702_v35 = vsel %vm689_vm1, %v682_v5, 0.0  ;;  %v756_v2 = vsel %vm754_vm2, %v725_v22, 0.0 }
 0x2ef   : > { %v1909_v63 = vadd.f32 %v702_v35, %v1810_v47  ;;  %v772_v31 = vadd.f32 %v756_v2, %v707_v42 }
 0x2f1   : > { %746 = vrot.lane.b32.xlu0 %v1909_v63, %s1347_s17  ;;  %vm884_vm3 = vcmp.lt.f32.partialorder %v772_v31, %v1617_v60  ;;  %v755_v60 = vsel %vm754_vm2, %v723_v1, 0.0 }
 0x2f2   : > { %vm901_vm5 = vmand %vm884_vm3, %vm899_vm4 }
 0x2f3   : > { %v917_v61 = vsel %vm901_vm5, 1.0, %v1348_v41 }
 0x2fd   : > { %v729_v57 = vpop.permute.xlu0 %728 }
 0x2fe   : > { %v758_v5 = vsel %vm754_vm2, %v729_v57, 0.0 }
 0x305   : > { %v731_v43 = vpop.permute.xlu2 %730 }
 0x306   : > { %v759_v45 = vsel %vm754_vm2, %v731_v43, 0.0 }
 0x307   : > { %v775_v23 = vadd.f32 %v759_v45, %v710_v59  ;;  %v771_v59 = vadd.f32 %v755_v60, %v1800_v11 }
 0x309   : > { %vm887_vm6 = vcmp.lt.f32.partialorder %v775_v23, %v1624_v0  ;;  %vm883_vm10 = vcmp.lt.f32.partialorder %v771_v59, %v1631_v4 }
 0x30a   : > { %934 = vadd.xlane.f32.xlu2 %v917_v61  ;;  %vm904_vm7 = vmand %vm887_vm6, %vm899_vm4 }
 0x30b   : > { %v920_v50 = vsel %vm904_vm7, 1.0, %v1348_v41  ;;  %vm900_vm11 = vmand %vm883_vm10, %vm899_vm4 }
 0x30c   : > { %v916_v22 = vsel %vm900_vm11, 1.0, %v1348_v41 }
 0x30d   : > { %v727_v42 = vpop.permute.xlu1 %726  ;;  %v749_v4 = vpop.permute.xlu2 %748 }
 0x30e   : > { %v757_v17 = vsel %vm754_vm2, %v727_v42, 0.0 }
 0x30f   : > { %v773_v44 = vadd.f32 %v757_v17, %v1828_v16 }
 0x311   : > { %vm885_vm8 = vcmp.lt.f32.partialorder %v773_v44, %v1619_v62  ;;  %v774_v62 = vadd.f32 %v758_v5, %v1817_v56  ;;  %v768_v44 = vsel %vm754_vm2, %v749_v4, 0.0 }
 0x312   : > { %940 = vadd.xlane.f32.xlu2 %v920_v50  ;;  %vm902_vm9 = vmand %vm885_vm8, %vm899_vm4  ;;  %v784_v59 = vadd.f32 %v768_v44, %v1853_v18 }
 0x313   : > { %v918_v0 = vsel %vm902_vm9, 1.0, %v1348_v41  ;;  %vm886_vm14 = vcmp.lt.f32.partialorder %v774_v62, %v1640_v9 }
 0x314   : > { %936 = vadd.xlane.f32.xlu1 %v918_v0  ;;  %vm903_vm15 = vmand %vm886_vm14, %vm899_vm4  ;;  %vm896_vm10 = vcmp.lt.f32.partialorder %v784_v59, %v1647_v13 }
 0x315   : > { %v733_v16 = vpop.permute.xlu1 %732  ;;  %vm913_vm11 = vmand %vm896_vm10, %vm899_vm4 }
 0x316   : > { %v760_v11 = vsel %vm754_vm2, %v733_v16, 0.0  ;;  %v929_v0 = vsel %vm913_vm11, 1.0, %v1348_v41 }
 0x317   : > { %v776_v35 = vadd.f32 %v760_v11, %v1835_v21  ;;  %v919_v21 = vsel %vm903_vm15, 1.0, %v1348_v41 }
 0x319   : > { %vm888_vm12 = vcmp.lt.f32.partialorder %v776_v35, %v1649_v14 }
 0x31a   : > { %vm905_vm13 = vmand %vm888_vm12, %vm899_vm4 }
 0x31b   : > { %932 = vadd.xlane.f32.xlu0 %v916_v22  ;;  %v921_v2 = vsel %vm905_vm13, 1.0, %v1348_v41 }
 0x31c   : > { %942 = vadd.xlane.f32.xlu1 %v921_v2 }
 0x31d   : > { %v751_v56 = vpop.permute.xlu1 %750 }
 0x323   : > { %v737_v31 = vpop.permute.xlu2 %736  ;;  %938 = vadd.xlane.f32.xlu0 %v919_v21 }
 0x324   : > { %v762_v14 = vsel %vm754_vm2, %v737_v31, 0.0 }
 0x325   : > { %v778_v43 = vadd.f32 %v762_v14, %v1879_v28 }
 0x327   : > { %vm890_vm0 = vcmp.lt.f32.partialorder %v778_v43, %v1628_v3 }
 0x328   : > { %vm907_vm1 = vmand %vm890_vm0, %vm899_vm4 }
 0x329   : > { %v923_v9 = vsel %vm907_vm1, 1.0, %v1348_v41 }
 0x32a   : > { %946 = vadd.xlane.f32.xlu2 %v923_v9 }
 0x32b   : > { %v739_v45 = vpop.permute.xlu1 %738 }
 0x32c   : > { %v763_v23 = vsel %vm754_vm2, %v739_v45, 0.0 }
 0x32d   : > { %v779_v61 = vadd.f32 %v763_v23, %v1860_v40 }
 0x32f   : > { %vm891_vm3 = vcmp.lt.f32.partialorder %v779_v61, %v1653_v19 }
 0x330   : > { %vm908_vm5 = vmand %vm891_vm3, %vm899_vm4 }
 0x331   : > { %v753_v28 = vpop.permute.xlu0 %752  ;;  %v924_v3 = vsel %vm908_vm5, 1.0, %v1348_v41 }
 0x332   : > { %948 = vadd.xlane.f32.xlu1 %v924_v3 }
 0x339   : > { %v735_v1 = vpop.permute.xlu0 %734 }
 0x33a   : > { %v761_v60 = vsel %vm754_vm2, %v735_v1, 0.0 }
 0x33b   : > { %v777_v42 = vadd.f32 %v761_v60, %v1874_v54  ;;  %v743_v17 = vpop.permute.xlu2 %742 }
 0x33c   : > { %v765_v19 = vsel %vm754_vm2, %v743_v17, 0.0 }
 0x33d   : > { %v781_v40 = vadd.f32 %v765_v19, %v1902_v27  ;;  %vm889_vm6 = vcmp.lt.f32.partialorder %v777_v42, %v1635_v7  ;;  %v769_v7 = vsel %vm754_vm2, %v751_v56, 0.0 }
 0x33e   : > { %vm906_vm7 = vmand %vm889_vm6, %vm899_vm4 }
 0x33f   : > { %v922_v50 = vsel %vm906_vm7, 1.0, %v1348_v41  ;;  %vm893_vm8 = vcmp.lt.f32.partialorder %v781_v40, %v1638_v8  ;;  %v785_v8 = vadd.f32 %v769_v7, %v1844_v58 }
 0x340   : > { %944 = vadd.xlane.f32.xlu0 %v922_v50  ;;  %vm910_vm9 = vmand %vm893_vm8, %vm899_vm4 }
 0x341   : > { %v926_v54 = vsel %vm910_vm9, 1.0, %v1348_v41  ;;  %vm897_vm14 = vcmp.lt.f32.partialorder %v785_v8, %v1667_v30 }
 0x342   : > { %952 = vadd.xlane.f32.xlu2 %v926_v54  ;;  %vm914_vm15 = vmand %vm897_vm14, %vm899_vm4 }
 0x343   : > { %v745_v57 = vpop.permute.xlu1 %744 }
 0x344   : > { %v766_v18 = vsel %vm754_vm2, %v745_v57, 0.0 }
 0x345   : > { %v782_v27 = vadd.f32 %v766_v18, %v1888_v34 }
 0x347   : > { %vm894_vm12 = vcmp.lt.f32.partialorder %v782_v27, %v1661_v25  ;;  %v930_v25 = vsel %vm914_vm15, 1.0, %v1348_v41 }
 0x348   : > { %vm911_vm13 = vmand %vm894_vm12, %vm899_vm4 }
 0x349   : > { %v927_v13 = vsel %vm911_vm13, 1.0, %v1348_v41 }
 0x34a   : > { %954 = vadd.xlane.f32.xlu1 %v927_v13  ;;  %958 = vadd.xlane.f32.xlu2 %v929_v0 }
 0x34b   : > { %v741_v5 = vpop.permute.xlu0 %740 }
 0x34c   : > { %v764_v34 = vsel %vm754_vm2, %v741_v5, 0.0 }
 0x34d   : > { %v780_v16 = vadd.f32 %v764_v34, %v1895_v24  ;;  %v770_v24 = vsel %vm754_vm2, %v753_v28, 0.0 }
 0x34e   : > { %v786_v35 = vadd.f32 %v770_v24, %v1867_v33 }
 0x34f   : > { %vm892_vm0 = vcmp.lt.f32.partialorder %v780_v16, %v1645_v12 }
 0x350   : > { %vm909_vm1 = vmand %vm892_vm0, %vm899_vm4  ;;  %vm898_vm6 = vcmp.lt.f32.partialorder %v786_v35, %v1655_v20 }
 0x351   : > { %v925_v58 = vsel %vm909_vm1, 1.0, %v1348_v41  ;;  %vm915_vm7 = vmand %vm898_vm6, %vm899_vm4 }
 0x352   : > { %960 = vadd.xlane.f32.xlu1 %v930_v25  ;;  %950 = vadd.xlane.f32.xlu0 %v925_v58  ;;  %v931_v22 = vsel %vm915_vm7, 1.0, %v1348_v41 }
 0x363   : > { %v747_v30 = vpop.permute.xlu0 %746 }
 0x364   : > { %v767_v11 = vsel %vm754_vm2, %v747_v30, 0.0  ;;  %vm980_vm2 = vcmp.eq.s32.totalorder %v1792_v26, 127 }
 0x365   : > { %v783_v12 = vadd.f32 %v767_v11, %v1909_v63 }
 0x367   : > { %vm895_vm3 = vcmp.lt.f32.partialorder %v783_v12, %v1651_v15 }
 0x368   : > { %vm912_vm5 = vmand %vm895_vm3, %vm899_vm4 }
 0x369   : > { %v928_v62 = vsel %vm912_vm5, 1.0, %v1348_v41 }
 0x36a   : > { %956 = vadd.xlane.f32.xlu0 %v928_v62 }
 0x372   : > { %962 = vadd.xlane.f32.xlu0 %v931_v22 }
 0x37d   : > { %v935_v15 = vpop.xlane.xlu2 %934 }
 0x37e   : > { %v965_v33 = vmin.f32 %v935_v15, 3.0 }
 0x380   : > { %v982_v63 = vsel %vm980_vm2, %v965_v33, %v1730_v48 }
 0x381   : > { %998 = vst [vmem:[%s2032_s20 + $0x8] sm:$0xff] %v982_v63 }
 0x385   : > { %v941_v20 = vpop.xlane.xlu2 %940 }
 0x386   : > { %v968_v41 = vmin.f32 %v941_v20, 3.0 }
 0x387   : > { %v937_v4 = vpop.xlane.xlu1 %936 }
 0x388   : > { %v985_v2 = vsel %vm980_vm2, %v968_v41, %v1745_v10  ;;  %v966_v21 = vmin.f32 %v937_v4, 3.0 }
 0x389   : > { %1001 = vst [vmem:[%s2032_s20 + $0x20] sm:$0xff] %v985_v2 }
 0x38a   : > { %v983_v48 = vsel %vm980_vm2, %v966_v21, %v1735_v49 }
 0x38b   : > { %999 = vst [vmem:[%s2032_s20 + $0x10] sm:$0xff] %v983_v48 }
 0x38e   : > { %v933_v56 = vpop.xlane.xlu0 %932 }
 0x38f   : > { %v964_v31 = vmin.f32 %v933_v56, 3.0  ;;  %v943_v14 = vpop.xlane.xlu1 %942 }
 0x390   : > { %v969_v43 = vmin.f32 %v943_v14, 3.0 }
 0x391   : > { %v981_v9 = vsel %vm980_vm2, %v964_v31, %v1725_v46 }
 0x392   : > { %997 = vst [vmem:[%s2032_s20] sm:$0xff] %v981_v9  ;;  %v986_v10 = vsel %vm980_vm2, %v969_v43, %v1753_v53 }
 0x393   : > { %1002 = vst [vmem:[%s2032_s20 + $0x28] sm:$0xff] %v986_v10 }
 0x396   : > { %v939_v45 = vpop.xlane.xlu0 %938 }
 0x397   : > { %v967_v23 = vmin.f32 %v939_v45, 3.0 }
 0x399   : > { %v984_v49 = vsel %vm980_vm2, %v967_v23, %v1740_v51 }
 0x39a   : > { %1000 = vst [vmem:[%s2032_s20 + $0x18] sm:$0xff] %v984_v49 }
 0x39d   : > { %v947_v61 = vpop.xlane.xlu2 %946 }
 0x39e   : > { %v971_v28 = vmin.f32 %v947_v61, 3.0 }
 0x3a0   : > { %v988_v46 = vsel %vm980_vm2, %v971_v28, %v1775_v32 }
 0x3a1   : > { %1004 = vst [vmem:[%s2032_s20 + $0x38] sm:$0xff] %v988_v46 }
 0x3a5   : > { %v949_v3 = vpop.xlane.xlu1 %948 }
 0x3a6   : > { %v972_v1 = vmin.f32 %v949_v3, 3.0 }
 0x3a8   : > { %v989_v53 = vsel %vm980_vm2, %v972_v1, %v1780_v36 }
 0x3a9   : > { %1005 = vst [vmem:[%s2032_s20 + $0x40] sm:$0xff] %v989_v53 }
 0x3b3   : > { %v945_v60 = vpop.xlane.xlu0 %944 }
 0x3b4   : > { %v970_v51 = vmin.f32 %v945_v60, 3.0 }
 0x3b5   : > { %v953_v42 = vpop.xlane.xlu2 %952 }
 0x3b6   : > { %v987_v17 = vsel %vm980_vm2, %v970_v51, %v1770_v29  ;;  %v974_v44 = vmin.f32 %v953_v42, 3.0 }
 0x3b7   : > { %1003 = vst [vmem:[%s2032_s20 + $0x30] sm:$0xff] %v987_v17 }
 0x3b8   : > { %v991_v32 = vsel %vm980_vm2, %v974_v44, %v1790_v6 }
 0x3b9   : > { %1007 = vst [vmem:[%s2032_s20 + $0x50] sm:$0xff] %v991_v32 }
 0x3bd   : > { %v955_v36 = vpop.xlane.xlu1 %954  ;;  %v959_v19 = vpop.xlane.xlu2 %958 }
 0x3be   : > { %v975_v40 = vmin.f32 %v955_v36, 3.0  ;;  %v977_v59 = vmin.f32 %v959_v19, 3.0 }
 0x3c0   : > { %v992_v50 = vsel %vm980_vm2, %v975_v40, %v1803_v38  ;;  %v994_v29 = vsel %vm980_vm2, %v977_v59, %v1750_v37 }
 0x3c1   : > { %1008 = vst [vmem:[%s2032_s20 + $0x58] sm:$0xff] %v992_v50 }
 0x3c2   : > { %1010 = vst [vmem:[%s2032_s20 + $0x68] sm:$0xff] %v994_v29 }
 0x3c5   : > { %v961_v6 = vpop.xlane.xlu1 %960  ;;  %v951_v54 = vpop.xlane.xlu0 %950 }
 0x3c6   : > { %v978_v57 = vmin.f32 %v961_v6, 3.0  ;;  %v973_v7 = vmin.f32 %v951_v54, 3.0 }
 0x3c8   : > { %v995_v18 = vsel %vm980_vm2, %v978_v57, %v1760_v55  ;;  %v990_v38 = vsel %vm980_vm2, %v973_v7, %v1785_v39 }
 0x3c9   : > { %1011 = vst [vmem:[%s2032_s20 + $0x70] sm:$0xff] %v995_v18 }
 0x3ca   : > { %1006 = vst [vmem:[%s2032_s20 + $0x48] sm:$0xff] %v990_v38 }
 0x3dd   : > { %v957_v37 = vpop.xlane.xlu0 %956 }
 0x3de   : > { %v976_v27 = vmin.f32 %v957_v37, 3.0 }
 0x3e0   : > { %v993_v8 = vsel %vm980_vm2, %v976_v27, %v1810_v47 }
 0x3e1   : > { %1009 = vst [vmem:[%s2032_s20 + $0x60] sm:$0xff] %v993_v8 }
 0x3e5   : > { %v963_v55 = vpop.xlane.xlu0 %962 }
 0x3e6   : > { %v979_v39 = vmin.f32 %v963_v55, 3.0 }
 0x3e8   : > { %v996_v13 = vsel %vm980_vm2, %v979_v39, %v1765_v52 }
 0x3e9   : > { %1012 = vst [vmem:[%s2032_s20 + $0x78] sm:$0xff] %v996_v13 }
 0x3ea   : > { %1308 = shalt.err (!%p1305_p3)
}
 0x3eb   : > { %s1349_s18 = smov 128   ;;  %s1350_s20 = smov 8  }
 0x3ec   : > { %1167 = dma.vmem_to_hbm [thread:$0]  (%p1424_p5), %s1027_s9, 2048, %s1029_s10, %s1014_s25, %s1349_s18, %s1349_s18, %s1350_s20  }
 0x3ed PF: > { %p1173_p4 = scmp.ge.s32.totalorder %s1343_s24, 2  ;;  %s1043_s26 = sand.u32 1, %s1331_s21  }
 0x3ee   : > { %s1044_s28 = scalar_lea.sflag [#allocation3], %s1043_s26 }
 0x3ef   : > { %p1170_p7 = pnand %p1173_p4, %p1428_p6 }
 0x3f1   : > { %p1171_p8 = pneg %p1170_p7 }
 0x3f3   : > { %1326 = dma.done.wait (%p1171_p8), %s1044_s28, 2048  }
 0x3f4   : > { %1328 = vsyncadd (%p1171_p8), %s1044_s28, 4294965248  ;;  %p16_p9 = scmp.ge.s32.totalorder %s1411_s27, 4   ;;  %s2138_s21 = smov %s1335_s22 }
 0x3f5   : > { %s2139_s22 = smov %s1339_s23  ;;  %s2140_s23 = smov %s1422_s30 }
 0x3f6   : > { %s2141_s24 = smov %s1411_s27  ;;  %18 = sbr.rel (!%p16_p9) target bundleno = 3 (0x3), region = 82 }
 0x3fb   :  { %1050 = vsyncpa [#allocation3], 1 }
 0x3fc   :  { %1052 = vsyncpa [#allocation3 + $0x1], 1 }

</bundles_post_ra>
